<compile_context>
chip_gen: v7x
topology: tpu7x:2x2x1
jax: 0.10.0
libtpu: 0.0.40
codegen_flags: <defaults>
</compile_context>

<pallas_src>
import functools

import jax
import jax.numpy as jnp
from jax.experimental import pallas as pl
from jax.experimental.pallas import tpu as pltpu

EMB_DIM = 32      # embedding_model output features (per branch)
FC1 = 64          # out_features of the LazyLinear
FC2 = 16
BN_EPS = 1e-5
OUT_LANES = 128   # packed output row: lanes [0,B) = probs, lane B = loss

# parameter-slab row layout (one (8,128) f32 tile)
ROW_BEMB = 0      # lanes [0, EMB_DIM)
ROW_B1 = 1        # lanes [0, FC1)      (BN1-folded bias)
ROW_B2 = 2        # lanes [0, FC2)      (BN2-folded bias)
ROW_W3 = 3        # lanes [0, FC2)      (final Linear weight as a row)
ROW_B3 = 4        # lane 0              (final Linear bias)
ROW_LAB = 5       # lanes [0, B)        (labels)


def siamese_kernel(x_ref, wemb_ref, w1_ref, w2_ref, slab_ref, out_ref):
    B = x_ref.shape[0] // 2  # static

    bemb = slab_ref[ROW_BEMB:ROW_BEMB + 1, 0:EMB_DIM]     # (1, 32)
    b1 = slab_ref[ROW_B1:ROW_B1 + 1, 0:FC1]               # (1, 64)
    b2 = slab_ref[ROW_B2:ROW_B2 + 1, 0:FC2]               # (1, 16)
    w3r = slab_ref[ROW_W3:ROW_W3 + 1, 0:FC2]              # (1, 16)
    b3 = slab_ref[ROW_B3:ROW_B3 + 1, 0:1]                 # (1, 1)
    lab = slab_ref[ROW_LAB:ROW_LAB + 1, :]                # (1, 128), labels in [0,B)

    # ---- shared embedding model on both branches at once (bf16 MXU, f32 acc) -
    e = jnp.dot(x_ref[...], wemb_ref[...], preferred_element_type=jnp.float32)
    e = jnp.maximum(e + bemb, 0.0)                        # [2B, EMB_DIM] f32
    e1 = e[:B, :]
    e2 = e[B:, :]

    # ---- torch.cat((y1, y2), dim=1) @ W1 as a split matmul; BN1 folded into W1/b1
    h = (jnp.dot(e1, w1_ref[0:EMB_DIM, :], preferred_element_type=jnp.float32)
         + jnp.dot(e2, w1_ref[EMB_DIM:2 * EMB_DIM, :],
                   preferred_element_type=jnp.float32)
         + b1)
    h = jnp.maximum(h, 0.0)                               # [B, FC1]

    # ---- Linear(FC1 -> FC2) with BN2 folded, + ReLU --------------------------
    h = jnp.dot(h, w2_ref[...], preferred_element_type=jnp.float32) + b2
    h = jnp.maximum(h, 0.0)                               # [B, FC2]

    # ---- Linear(FC2 -> 1) as VPU multiply + lane reduce (avoid N=1 MXU matmul)
    logits = jnp.sum(h * w3r, axis=-1, keepdims=True) + b3  # [B, 1]
    p = jax.nn.sigmoid(logits)                              # [B, 1]

    # ---- scatter probs onto lanes [0, B) of a single lane-dense row ----------
    lane2d = jax.lax.broadcasted_iota(jnp.int32, (B, OUT_LANES), 1)
    row2d = jax.lax.broadcasted_iota(jnp.int32, (B, OUT_LANES), 0)
    p_row = jnp.sum(jnp.where(lane2d == row2d, p, 0.0),
                    axis=0, keepdims=True)                  # (1, 128)

    # ---- BCELoss(y.squeeze(), labels), PyTorch-style log clamp at -100 -------
    lane1d = jax.lax.broadcasted_iota(jnp.int32, (1, OUT_LANES), 1)
    logp = jnp.maximum(jnp.log(p_row), -100.0)
    log1mp = jnp.maximum(jnp.log(1.0 - p_row), -100.0)
    bce = -(lab * logp + (1.0 - lab) * log1mp)
    bce = jnp.where(lane1d < B, bce, 0.0)
    loss = jnp.sum(bce, axis=1, keepdims=True) * (1.0 / B)  # (1, 1)

    # single lane-dense output: probs in lanes [0, B), loss in lane B
    out_ref[...] = p_row + jnp.where(lane1d == B, loss, 0.0)


@jax.jit
def siamese_forward(y1, y2, labels, params):
    """y1, y2: [B, C, H, W]; labels: [B]. Returns (probs [B, 1], bce_loss scalar)."""
    (wemb, bemb, w1, b1, g1, beta1, m1, v1,
     w2, b2, g2, beta2, m2, v2, w3, b3) = params

    B = y1.shape[0]
    assert B + 1 <= OUT_LANES, "packed output assumes B < 128"
    D = int(y1.size // B)

    # Stack both branches into one [2B, D] bf16 matrix: one DMA, one MXU weight push.
    x = jnp.concatenate(
        [y1.reshape(B, D), y2.reshape(B, D)], axis=0).astype(jnp.bfloat16)
    wemb_bf16 = wemb.astype(jnp.bfloat16)

    # Fold eval-mode BatchNorm into the preceding Linear weights/biases (host side).
    s1 = g1 / jnp.sqrt(v1 + BN_EPS)
    w1f = (w1 * s1).astype(jnp.float32)
    b1f = (b1 - m1) * s1 + beta1
    s2 = g2 / jnp.sqrt(v2 + BN_EPS)
    w2f = (w2 * s2).astype(jnp.float32)
    b2f = (b2 - m2) * s2 + beta2

    # Pack all small row vectors + labels into a single (8, 128) f32 slab.
    slab = jnp.zeros((8, OUT_LANES), jnp.float32)
    slab = slab.at[ROW_BEMB, :EMB_DIM].set(bemb.reshape(-1))
    slab = slab.at[ROW_B1, :FC1].set(b1f.reshape(-1))
    slab = slab.at[ROW_B2, :FC2].set(b2f.reshape(-1))
    slab = slab.at[ROW_W3, :FC2].set(w3.reshape(-1))
    slab = slab.at[ROW_B3, 0].set(b3.reshape(-1)[0])
    slab = slab.at[ROW_LAB, :B].set(labels.reshape(-1).astype(jnp.float32))

    vmem = pl.BlockSpec(memory_space=pltpu.MemorySpace.VMEM)
    out = pl.pallas_call(
        siamese_kernel,
        out_shape=jax.ShapeDtypeStruct((1, OUT_LANES), jnp.float32),
        in_specs=[vmem] * 5,
        out_specs=vmem,
    )(x, wemb_bf16, w1f, w2f, slab)

    probs = out[0, :B].reshape(B, 1)
    loss = out[0, B]
    return probs, loss


def init_params(key, in_features):
    """Deterministic, PyTorch-default-style (uniform fan-in) initialization."""
    keys = jax.random.split(key, 8)

    def linear(k, fan_in, fan_out):
        bound = 1.0 / float(fan_in) ** 0.5
        kw, kb = jax.random.split(k)
        w = jax.random.uniform(kw, (fan_in, fan_out), jnp.float32, -bound, bound)
        b = jax.random.uniform(kb, (1, fan_out), jnp.float32, -bound, bound)
        return w, b

    wemb, bemb = linear(keys[0], in_features, EMB_DIM)   # embedding Linear
    w1, b1 = linear(keys[1], 2 * EMB_DIM, FC1)           # LazyLinear(64)
    w2, b2 = linear(keys[2], FC1, FC2)                   # Linear(64, 16)
    w3, b3 = linear(keys[3], FC2, 1)                     # Linear(16, 1)

    # BatchNorm1d params (gamma=1, beta=0) + synthetic running stats (eval mode).
    g1 = jnp.ones((1, FC1), jnp.float32)
    beta1 = jnp.zeros((1, FC1), jnp.float32)
    m1 = 0.1 * jax.random.normal(keys[4], (1, FC1), jnp.float32)
    v1 = 1.0 + 0.05 * jax.random.uniform(keys[5], (1, FC1), jnp.float32)

    g2 = jnp.ones((1, FC2), jnp.float32)
    beta2 = jnp.zeros((1, FC2), jnp.float32)
    m2 = 0.1 * jax.random.normal(keys[6], (1, FC2), jnp.float32)
    v2 = 1.0 + 0.05 * jax.random.uniform(keys[7], (1, FC2), jnp.float32)

    return (wemb, bemb,
            w1, b1, g1, beta1, m1, v1,
            w2, b2, g2, beta2, m2, v2,
            w3, b3)


if __name__ == "__main__":
    key = jax.random.PRNGKey(0)
    kx1, kx2, kp = jax.random.split(key, 3)

    B, C, H, W = 8, 4, 16, 16
    y1 = jax.random.normal(kx1, (B, C, H, W), jnp.float32)
    y2 = jax.random.normal(kx2, (B, C, H, W), jnp.float32)
    labels = (jnp.arange(B) % 2).astype(jnp.float32)

    params = init_params(kp, C * H * W)

    probs, bce_loss = siamese_forward(y1, y2, labels, params)
    jax.block_until_ready((probs, bce_loss))

    assert probs.shape == (B, 1)
    assert bce_loss.shape == ()
    assert bool(jnp.isfinite(bce_loss))
    print("KERNEL_OK")
</pallas_src>

<mosaic_0001>
module attributes {stable_mosaic.version = 11 : i64} {
  func.func @siamese_kernel(%arg0: memref<16x1024xbf16, #tpu.memory_space<vmem>>, %arg1: memref<1024x32xbf16, #tpu.memory_space<vmem>>, %arg2: memref<64x64xf32, #tpu.memory_space<vmem>>, %arg3: memref<64x16xf32, #tpu.memory_space<vmem>>, %arg4: memref<8x128xf32, #tpu.memory_space<vmem>>, %arg5: memref<1x128xf32, #tpu.memory_space<vmem>>) attributes {dimension_semantics = [], scalar_prefetch = 0 : i64, scratch_operands = 0 : i64, tpu.core_type = #tpu.core_type<tc>} {
    %c0 = arith.constant 0 : index
    %c0_0 = arith.constant 0 : index
    %0 = vector.load %arg4[%c0, %c0_0] : memref<8x128xf32, #tpu.memory_space<vmem>>, vector<1x32xf32>
    %c1 = arith.constant 1 : index
    %c0_1 = arith.constant 0 : index
    %1 = vector.load %arg4[%c1, %c0_1] : memref<8x128xf32, #tpu.memory_space<vmem>>, vector<1x64xf32>
    %c2 = arith.constant 2 : index
    %c0_2 = arith.constant 0 : index
    %2 = vector.load %arg4[%c2, %c0_2] : memref<8x128xf32, #tpu.memory_space<vmem>>, vector<1x16xf32>
    %c3 = arith.constant 3 : index
    %c0_3 = arith.constant 0 : index
    %3 = vector.load %arg4[%c3, %c0_3] : memref<8x128xf32, #tpu.memory_space<vmem>>, vector<1x16xf32>
    %c4 = arith.constant 4 : index
    %c0_4 = arith.constant 0 : index
    %4 = vector.load %arg4[%c4, %c0_4] : memref<8x128xf32, #tpu.memory_space<vmem>>, vector<1x1xf32>
    %c5 = arith.constant 5 : index
    %c0_5 = arith.constant 0 : index
    %5 = vector.load %arg4[%c5, %c0_5] : memref<8x128xf32, #tpu.memory_space<vmem>>, vector<1x128xf32>
    %c0_6 = arith.constant 0 : index
    %c0_7 = arith.constant 0 : index
    %6 = vector.load %arg0[%c0_6, %c0_7] : memref<16x1024xbf16, #tpu.memory_space<vmem>>, vector<16x1024xbf16>
    %c0_8 = arith.constant 0 : index
    %c0_9 = arith.constant 0 : index
    %7 = vector.load %arg1[%c0_8, %c0_9] : memref<1024x32xbf16, #tpu.memory_space<vmem>>, vector<1024x32xbf16>
    %cst = arith.constant dense<0.000000e+00> : vector<16x32xf32>
    %8 = tpu.matmul %6, %7, %cst {dimension_numbers = #tpu.dot_dimension_numbers<[1], [0], [0], [1], [0, 0, 1, 1], [], []>} : vector<16x1024xbf16>, vector<1024x32xbf16>, vector<16x32xf32> -> vector<16x32xf32>
    %9 = vector.broadcast %0 : vector<1x32xf32> to vector<16x32xf32>
    %10 = arith.addf %8, %9 : vector<16x32xf32>
    %cst_10 = arith.constant 0.000000e+00 : f32
    %11 = vector.broadcast %cst_10 : f32 to vector<16x32xf32>
    %12 = arith.maximumf %10, %11 : vector<16x32xf32>
    %13 = vector.extract_strided_slice %12 {offsets = [0, 0], sizes = [8, 32], strides = [1, 1]} : vector<16x32xf32> to vector<8x32xf32>
    %14 = vector.extract_strided_slice %12 {offsets = [8, 0], sizes = [8, 32], strides = [1, 1]} : vector<16x32xf32> to vector<8x32xf32>
    %c0_11 = arith.constant 0 : index
    %c0_12 = arith.constant 0 : index
    %15 = vector.load %arg2[%c0_11, %c0_12] : memref<64x64xf32, #tpu.memory_space<vmem>>, vector<32x64xf32>
    %cst_13 = arith.constant dense<0.000000e+00> : vector<8x64xf32>
    %16 = tpu.matmul %13, %15, %cst_13 {dimension_numbers = #tpu.dot_dimension_numbers<[1], [0], [0], [1], [0, 0, 1, 1], [], []>} : vector<8x32xf32>, vector<32x64xf32>, vector<8x64xf32> -> vector<8x64xf32>
    %c32 = arith.constant 32 : index
    %c0_14 = arith.constant 0 : index
    %17 = vector.load %arg2[%c32, %c0_14] : memref<64x64xf32, #tpu.memory_space<vmem>>, vector<32x64xf32>
    %cst_15 = arith.constant dense<0.000000e+00> : vector<8x64xf32>
    %18 = tpu.matmul %14, %17, %cst_15 {dimension_numbers = #tpu.dot_dimension_numbers<[1], [0], [0], [1], [0, 0, 1, 1], [], []>} : vector<8x32xf32>, vector<32x64xf32>, vector<8x64xf32> -> vector<8x64xf32>
    %19 = arith.addf %16, %18 : vector<8x64xf32>
    %20 = vector.broadcast %1 : vector<1x64xf32> to vector<8x64xf32>
    %21 = arith.addf %19, %20 : vector<8x64xf32>
    %cst_16 = arith.constant 0.000000e+00 : f32
    %22 = vector.broadcast %cst_16 : f32 to vector<8x64xf32>
    %23 = arith.maximumf %21, %22 : vector<8x64xf32>
    %c0_17 = arith.constant 0 : index
    %c0_18 = arith.constant 0 : index
    %24 = vector.load %arg3[%c0_17, %c0_18] : memref<64x16xf32, #tpu.memory_space<vmem>>, vector<64x16xf32>
    %cst_19 = arith.constant dense<0.000000e+00> : vector<8x16xf32>
    %25 = tpu.matmul %23, %24, %cst_19 {dimension_numbers = #tpu.dot_dimension_numbers<[1], [0], [0], [1], [0, 0, 1, 1], [], []>} : vector<8x64xf32>, vector<64x16xf32>, vector<8x16xf32> -> vector<8x16xf32>
    %26 = vector.broadcast %2 : vector<1x16xf32> to vector<8x16xf32>
    %27 = arith.addf %25, %26 : vector<8x16xf32>
    %cst_20 = arith.constant 0.000000e+00 : f32
    %28 = vector.broadcast %cst_20 : f32 to vector<8x16xf32>
    %29 = arith.maximumf %27, %28 : vector<8x16xf32>
    %30 = vector.broadcast %3 : vector<1x16xf32> to vector<8x16xf32>
    %31 = arith.mulf %29, %30 : vector<8x16xf32>
    %cst_21 = arith.constant dense<0.000000e+00> : vector<8xf32>
    %32 = vector.multi_reduction <add>, %31, %cst_21 [1] : vector<8x16xf32> to vector<8xf32>
    %33 = vector.shape_cast %32 : vector<8xf32> to vector<8x1xf32>
    %34 = vector.broadcast %4 : vector<1x1xf32> to vector<8x1xf32>
    %35 = arith.addf %33, %34 : vector<8x1xf32>
    %36 = arith.negf %35 : vector<8x1xf32>
    %37 = math.exp %36 : vector<8x1xf32>
    %cst_22 = arith.constant 1.000000e+00 : f32
    %38 = vector.broadcast %cst_22 : f32 to vector<8x1xf32>
    %39 = arith.addf %38, %37 : vector<8x1xf32>
    %40 = arith.divf %38, %39 : vector<8x1xf32>
    %41 = tpu.iota {dimensions = array<i32: 1>} : vector<8x128xi32>
    %42 = tpu.iota {dimensions = array<i32: 0>} : vector<8x128xi32>
    %43 = arith.cmpi eq, %41, %42 : vector<8x128xi32>
    %cst_23 = arith.constant 0.000000e+00 : f32
    %44 = vector.shape_cast %40 : vector<8x1xf32> to vector<8x1xf32>
    %45 = vector.broadcast %44 : vector<8x1xf32> to vector<8x128xf32>
    %46 = vector.broadcast %cst_23 : f32 to vector<8x128xf32>
    %47 = arith.select %43, %45, %46 : vector<8x128xi1>, vector<8x128xf32>
    %cst_24 = arith.constant dense<0.000000e+00> : vector<128xf32>
    %48 = vector.multi_reduction <add>, %47, %cst_24 [0] : vector<8x128xf32> to vector<128xf32>
    %49 = vector.shape_cast %48 : vector<128xf32> to vector<1x128xf32>
    %50 = tpu.iota {dimensions = array<i32: 1>} : vector<1x128xi32>
    %51 = math.log %49 : vector<1x128xf32>
    %cst_25 = arith.constant -1.000000e+02 : f32
    %52 = vector.broadcast %cst_25 : f32 to vector<1x128xf32>
    %53 = arith.maximumf %51, %52 : vector<1x128xf32>
    %cst_26 = arith.constant 1.000000e+00 : f32
    %54 = vector.broadcast %cst_26 : f32 to vector<1x128xf32>
    %55 = arith.subf %54, %49 : vector<1x128xf32>
    %56 = math.log %55 : vector<1x128xf32>
    %cst_27 = arith.constant -1.000000e+02 : f32
    %57 = vector.broadcast %cst_27 : f32 to vector<1x128xf32>
    %58 = arith.maximumf %56, %57 : vector<1x128xf32>
    %59 = arith.mulf %5, %53 : vector<1x128xf32>
    %cst_28 = arith.constant 1.000000e+00 : f32
    %60 = vector.broadcast %cst_28 : f32 to vector<1x128xf32>
    %61 = arith.subf %60, %5 : vector<1x128xf32>
    %62 = arith.mulf %61, %58 : vector<1x128xf32>
    %63 = arith.addf %59, %62 : vector<1x128xf32>
    %cst_29 = arith.constant 0.000000e+00 : f32
    %64 = vector.broadcast %cst_29 : f32 to vector<1x128xf32>
    %65 = arith.subf %64, %63 : vector<1x128xf32>
    %c8_i32 = arith.constant 8 : i32
    %66 = vector.broadcast %c8_i32 : i32 to vector<1x128xi32>
    %67 = arith.cmpi slt, %50, %66 : vector<1x128xi32>
    %cst_30 = arith.constant 0.000000e+00 : f32
    %68 = vector.broadcast %cst_30 : f32 to vector<1x128xf32>
    %69 = arith.select %67, %65, %68 : vector<1x128xi1>, vector<1x128xf32>
    %cst_31 = arith.constant dense<0.000000e+00> : vector<1xf32>
    %70 = vector.multi_reduction <add>, %69, %cst_31 [1] : vector<1x128xf32> to vector<1xf32>
    %71 = vector.shape_cast %70 : vector<1xf32> to vector<1x1xf32>
    %cst_32 = arith.constant 1.250000e-01 : f32
    %72 = vector.broadcast %cst_32 : f32 to vector<1x1xf32>
    %73 = arith.mulf %71, %72 : vector<1x1xf32>
    %c8_i32_33 = arith.constant 8 : i32
    %74 = vector.broadcast %c8_i32_33 : i32 to vector<1x128xi32>
    %75 = arith.cmpi eq, %50, %74 : vector<1x128xi32>
    %cst_34 = arith.constant 0.000000e+00 : f32
    %76 = vector.shape_cast %73 : vector<1x1xf32> to vector<1x1xf32>
    %77 = vector.broadcast %76 : vector<1x1xf32> to vector<1x128xf32>
    %78 = vector.broadcast %cst_34 : f32 to vector<1x128xf32>
    %79 = arith.select %75, %77, %78 : vector<1x128xi1>, vector<1x128xf32>
    %80 = arith.addf %49, %79 : vector<1x128xf32>
    %c0_35 = arith.constant 0 : index
    %c0_36 = arith.constant 0 : index
    %81 = vector.load %arg5[%c0_35, %c0_36] : memref<1x128xf32, #tpu.memory_space<vmem>>, vector<1x128xf32>
    tpu.vector_store %arg5[%c0_35, %c0_36], %80 {strides = array<i32>} : memref<1x128xf32, #tpu.memory_space<vmem>>, vector<1x128xf32>,
    return
  }
}

</mosaic_0001>

<bundles_post_ra>
// kernel: siamese_forward.1
= control target key start
LH: loop header
LB: loop body
LE: loop exit
PB: predicated region body
PF: predicated region fallthrough
CT: control target
= control target key end

     0   :  { %vm1400_vm0 = vmmov 0   ;;  %vm765_vm1 = vcmask 261120   ;;  %vm930_vm2 = vcmask 523264   ;;  %vm1010_vm3 = vcmask 130048   ;;  %s1729_s1 = inlined_call_operand.vmem [shape: bf16[1024,32], index: 1, kind: input, shape index: {}]   ;;  %s1730_s0 = inlined_call_operand.vmem [shape: bf16[16,1024], index: 0, kind: input, shape index: {}]   ;;  %s1731_s2 = inlined_call_operand.vmem [shape: f32[64,64], index: 2, kind: input, shape index: {}]   ;;  %s1732_s3 = inlined_call_operand.vmem [shape: f32[64,16], index: 3, kind: input, shape index: {}]   ;;  %s1733_s4 = inlined_call_operand.vmem [shape: f32[8,128], index: 4, kind: input, shape index: {}]   ;;  %s1734_s5 = inlined_call_operand.vmem [shape: f32[1,128], index: 5, kind: output, shape index: {}]  }
   0x1   :  { %v1327_v0 = vld [vmem:[%s1729_s1 + $0x40] sm:$0xff]   ;;  %v1331_v4 = vld [vmem:[%s1729_s1 + $0x48] sm:$0xff]   ;;  %v1335_v8 = vld [vmem:[%s1729_s1 + $0x50] sm:$0xff]   ;;  %vm1056_vm6 = vcmask 1040384  }
   0x2   :  { %v1328_v1 = vld [vmem:[%s1729_s1 + $0xc0] sm:$0xff]   ;;  %1150 = vmatprep.subr.bf16.mxu0 %v1327_v0  ;;  %v1332_v5 = vld [vmem:[%s1729_s1 + $0xc8] sm:$0xff]   ;;  %v1336_v9 = vld [vmem:[%s1729_s1 + $0xd0] sm:$0xff]  }
   0x3   :  { %v1329_v2 = vld [vmem:[%s1729_s1] sm:$0xff]   ;;  %1172 = vmatprep.subr.bf16.mxu1 %v1328_v1  ;;  %v1333_v6 = vld [vmem:[%s1729_s1 + $0x8] sm:$0xff]   ;;  %v1337_v10 = vld [vmem:[%s1729_s1 + $0x10] sm:$0xff]  }
   0x4   :  { %v1330_v3 = vld [vmem:[%s1729_s1 + $0x80] sm:$0xff]   ;;  %1151 = vmatpush3.bf16.msra.mxu0 %v1329_v2  ;;  %v1334_v7 = vld [vmem:[%s1729_s1 + $0x88] sm:$0xff]   ;;  %v1338_v11 = vld [vmem:[%s1729_s1 + $0x90] sm:$0xff]  }
   0x5   :  { %1173 = vmatpush3.bf16.msra.mxu1 %v1330_v3  ;;  %1152 = vmatprep.subr.bf16.mxu0 %v1331_v4  ;;  %v1339_v12 = vld [vmem:[%s1729_s1 + $0x58] sm:$0xff]   ;;  %v1343_v16 = vld [vmem:[%s1729_s1 + $0x60] sm:$0xff]   ;;  %v1347_v20 = vld [vmem:[%s1729_s1 + $0x68] sm:$0xff]  }
   0x6   :  { %1174 = vmatprep.subr.bf16.mxu1 %v1332_v5  ;;  %v1340_v13 = vld [vmem:[%s1729_s1 + $0xd8] sm:$0xff]   ;;  %v1344_v17 = vld [vmem:[%s1729_s1 + $0xe0] sm:$0xff]   ;;  %v1348_v21 = vld [vmem:[%s1729_s1 + $0xe8] sm:$0xff]  }
   0x7   :  { %v1341_v14 = vld [vmem:[%s1729_s1 + $0x18] sm:$0xff]   ;;  %v1345_v18 = vld [vmem:[%s1729_s1 + $0x20] sm:$0xff]   ;;  %v1349_v22 = vld [vmem:[%s1729_s1 + $0x28] sm:$0xff]  }
   0x8   :  { %1153 = vmatpush3.bf16.msra.mxu0 %v1333_v6  ;;  %v1342_v15 = vld [vmem:[%s1729_s1 + $0x98] sm:$0xff]   ;;  %v1346_v19 = vld [vmem:[%s1729_s1 + $0xa0] sm:$0xff]   ;;  %v1350_v23 = vld [vmem:[%s1729_s1 + $0xa8] sm:$0xff]  }
   0x9   :  { %1175 = vmatpush3.bf16.msra.mxu1 %v1334_v7  ;;  %1154 = vmatprep.subr.bf16.mxu0 %v1335_v8  ;;  %v1351_v24 = vld [vmem:[%s1729_s1 + $0x70] sm:$0xff]   ;;  %v1355_v28 = vld [vmem:[%s1729_s1 + $0x78] sm:$0xff]   ;;  %v27_v32 = vld [vmem:[%s1730_s0] sm:$0xff] }
   0xa   :  { %1176 = vmatprep.subr.bf16.mxu1 %v1336_v9  ;;  %v1352_v25 = vld [vmem:[%s1729_s1 + $0xf0] sm:$0xff]   ;;  %v1356_v29 = vld [vmem:[%s1729_s1 + $0xf8] sm:$0xff]   ;;  %v31_v33 = vld [vmem:[%s1730_s0 + $0x20] sm:$0xff] }
   0xb   :  { %v1353_v26 = vld [vmem:[%s1729_s1 + $0x30] sm:$0xff]   ;;  %v1357_v30 = vld [vmem:[%s1729_s1 + $0x38] sm:$0xff]   ;;  %v28_v34 = vld [vmem:[%s1730_s0 + $0x8] sm:$0xff]  ;;  %v1070_v35 = vcombine.low %v27_v32, %v31_v33  ;;  %v1071_v36 = vcombine.high %v27_v32, %v31_v33 }
   0xc   :  { %1155 = vmatpush3.bf16.msra.mxu0 %v1337_v10  ;;  %v1354_v27 = vld [vmem:[%s1729_s1 + $0xb0] sm:$0xff]   ;;  %v1358_v31 = vld [vmem:[%s1729_s1 + $0xb8] sm:$0xff]   ;;  %v32_v37 = vld [vmem:[%s1730_s0 + $0x28] sm:$0xff] }
   0xd   :  { %1177 = vmatpush3.bf16.msra.mxu1 %v1338_v11  ;;  %1156 = vmatprep.subr.bf16.mxu0 %v1339_v12  ;;  %v1072_v38 = vcombine.low %v28_v34, %v32_v37  ;;  %v1073_v39 = vcombine.high %v28_v34, %v32_v37  ;;  %v1359_v40 = vld [vmem:[%s1729_s1 + $0x140] sm:$0xff]   ;;  %v1363_v44 = vld [vmem:[%s1729_s1 + $0x148] sm:$0xff]   ;;  %v1367_v48 = vld [vmem:[%s1729_s1 + $0x150] sm:$0xff]  }
   0xe   :  { %1178 = vmatprep.subr.bf16.mxu1 %v1340_v13  ;;  %623 = vmatprep.mubr.bf16.mxu0 %v1071_v36  ;;  %v1360_v41 = vld [vmem:[%s1729_s1 + $0x1c0] sm:$0xff]   ;;  %v1364_v45 = vld [vmem:[%s1729_s1 + $0x1c8] sm:$0xff]   ;;  %v1368_v49 = vld [vmem:[%s1729_s1 + $0x1d0] sm:$0xff]  }
   0xf   :  { %664 = vmatprep.mubr.bf16.mxu1 %v1073_v39  ;;  %v1361_v42 = vld [vmem:[%s1729_s1 + $0x100] sm:$0xff]   ;;  %v1365_v46 = vld [vmem:[%s1729_s1 + $0x108] sm:$0xff]   ;;  %v1369_v50 = vld [vmem:[%s1729_s1 + $0x110] sm:$0xff]  }
  0x10   :  { %1157 = vmatpush3.bf16.msra.mxu0 %v1341_v14  ;;  %v1362_v43 = vld [vmem:[%s1729_s1 + $0x180] sm:$0xff]   ;;  %v1366_v47 = vld [vmem:[%s1729_s1 + $0x188] sm:$0xff]   ;;  %v1370_v51 = vld [vmem:[%s1729_s1 + $0x190] sm:$0xff]  }
  0x11   :  { %1179 = vmatpush3.bf16.msra.mxu1 %v1342_v15  ;;  %1158 = vmatprep.subr.bf16.mxu0 %v1343_v16  ;;  %v1371_v52 = vld [vmem:[%s1729_s1 + $0x158] sm:$0xff]   ;;  %v1375_v56 = vld [vmem:[%s1729_s1 + $0x160] sm:$0xff]   ;;  %v1379_v60 = vld [vmem:[%s1729_s1 + $0x168] sm:$0xff]  }
  0x12   :  { %1180 = vmatprep.subr.bf16.mxu1 %v1344_v17  ;;  %v1372_v53 = vld [vmem:[%s1729_s1 + $0x1d8] sm:$0xff]   ;;  %v1376_v57 = vld [vmem:[%s1729_s1 + $0x1e0] sm:$0xff]   ;;  %v1380_v61 = vld [vmem:[%s1729_s1 + $0x1e8] sm:$0xff]  }
  0x13   :  { %v1373_v54 = vld [vmem:[%s1729_s1 + $0x118] sm:$0xff]   ;;  %v1377_v58 = vld [vmem:[%s1729_s1 + $0x120] sm:$0xff]   ;;  %v1381_v62 = vld [vmem:[%s1729_s1 + $0x128] sm:$0xff]  }
  0x14   :  { %1159 = vmatpush3.bf16.msra.mxu0 %v1345_v18  ;;  %v1374_v55 = vld [vmem:[%s1729_s1 + $0x198] sm:$0xff]   ;;  %v1378_v59 = vld [vmem:[%s1729_s1 + $0x1a0] sm:$0xff]   ;;  %v1382_v63 = vld [vmem:[%s1729_s1 + $0x1a8] sm:$0xff]  }
  0x15   :  { %1181 = vmatpush3.bf16.msra.mxu1 %v1346_v19  ;;  %1160 = vmatprep.subr.bf16.mxu0 %v1347_v20  ;;  %v1383_v0 = vld [vmem:[%s1729_s1 + $0x170] sm:$0xff]   ;;  %v1387_v4 = vld [vmem:[%s1729_s1 + $0x178] sm:$0xff]   ;;  %v761_v16 = vld [vmem:[%s1731_s2 + $0x20] sm:$0xff]  ;;  %v1399_v19 = vmov 0.0|0.0  }
  0x16   :  { %1182 = vmatprep.subr.bf16.mxu1 %v1348_v21  ;;  %v1384_v1 = vld [vmem:[%s1729_s1 + $0x1f0] sm:$0xff]   ;;  %v1388_v5 = vld [vmem:[%s1729_s1 + $0x1f8] sm:$0xff]   ;;  %v762_v17 = vld [vmem:[%s1731_s2 + $0x28] sm:$0xff] }
  0x17   :  { %v1385_v2 = vld [vmem:[%s1729_s1 + $0x130] sm:$0xff]   ;;  %v1389_v6 = vld [vmem:[%s1729_s1 + $0x138] sm:$0xff]   ;;  %v1299_v18 = vpack.c.bf16 %v762_v17, %v761_v16 }
  0x18   :  { %1161 = vmatpush3.bf16.msra.mxu0 %v1349_v22  ;;  %v1386_v3 = vld [vmem:[%s1729_s1 + $0x1b0] sm:$0xff]   ;;  %v1390_v7 = vld [vmem:[%s1729_s1 + $0x1b8] sm:$0xff]  }
  0x19   :  { %1183 = vmatpush3.bf16.msra.mxu1 %v1350_v23  ;;  %1162 = vmatprep.subr.bf16.mxu0 %v1351_v24  ;;  %v29_v8 = vld [vmem:[%s1730_s0 + $0x10] sm:$0xff]  ;;  %v30_v12 = vld [vmem:[%s1730_s0 + $0x18] sm:$0xff]  ;;  %v1401_v23 = vmov 0.0   ;;  %v918_v24 = vld [vmem:[%s1732_s3] sm:$0xff] }
  0x1a   :  { %1184 = vmatprep.subr.bf16.mxu1 %v1352_v25  ;;  %v33_v9 = vld [vmem:[%s1730_s0 + $0x30] sm:$0xff]  ;;  %v34_v13 = vld [vmem:[%s1730_s0 + $0x38] sm:$0xff]  ;;  %v919_v25 = vld [vmem:[%s1732_s3 + $0x8] sm:$0xff] }
  0x1b   :  { %v1074_v10 = vcombine.low %v29_v8, %v33_v9  ;;  %v1075_v11 = vcombine.high %v29_v8, %v33_v9  ;;  %v1076_v14 = vcombine.low %v30_v12, %v34_v13  ;;  %v1077_v15 = vcombine.high %v30_v12, %v34_v13  ;;  %v763_v20 = vld [vmem:[%s1731_s2 + $0x30] sm:$0xff]  ;;  %v764_v21 = vld [vmem:[%s1731_s2 + $0x38] sm:$0xff]  ;;  %v923_v8 = vld [vmem:[%s1732_s3 + $0x28] sm:$0xff] }
  0x1c   :  { %1163 = vmatpush3.bf16.msra.mxu0 %v1353_v26  ;;  %v1302_v22 = vpack.c.bf16 %v764_v21, %v763_v20  ;;  %v1311_v26 = vpack.c.bf16 %v919_v25, %v918_v24  ;;  %v1145_v21 = vld [vmem:[%s1733_s4 + $0x2] ss:$0 sm:$0xff]  ;;  %v1147_v25 = vld [vmem:[%s1733_s4 + $0x3] ss:$0 sm:$0xff] }
  0x1d   :  { %1185 = vmatpush3.bf16.msra.mxu1 %v1354_v27  ;;  %1164 = vmatprep.subr.bf16.mxu0 %v1355_v28 }
  0x1e   :  { %1186 = vmatprep.subr.bf16.mxu1 %v1356_v29  ;;  %v1069_v29 = vld [vmem:[%s1733_s4] ss:$0 sm:$0xff] }
  0x20   :  { %1165 = vmatpush3.bf16.msra.mxu0 %v1357_v30 }
  0x21   :  { %1187 = vmatpush3.bf16.msra.mxu1 %v1358_v31  ;;  %1194 = vmatprep.subr.bf16.mxu0 %v1359_v40 }
  0x22   :  { %1216 = vmatprep.subr.bf16.mxu1 %v1360_v41 }
  0x23   :  { %624 = vmatmul.mubr.bf16.vlgmr.msra.gmra.mrb[0].mxu0 %v1070_v35 }
  0x24   :  { %665 = vmatmul.mubr.bf16.vlgmr.msra.gmra.mrb[0].mxu1 %v1072_v38  ;;  %1195 = vmatpush3.bf16.msra.mxu0 %v1361_v42 }
  0x25   :  { %1217 = vmatpush3.bf16.msra.mxu1 %v1362_v43  ;;  %1196 = vmatprep.subr.bf16.mxu0 %v1363_v44 }
  0x26   :  { %1218 = vmatprep.subr.bf16.mxu1 %v1364_v45  ;;  %705 = vmatprep.mubr.bf16.mxu0 %v1075_v11  ;;  %v925_v11 = vld [vmem:[%s1732_s3 + $0x38] sm:$0xff] }
  0x27   :  { %746 = vmatprep.mubr.bf16.mxu1 %v1077_v15  ;;  %v1144_v15 = vld [vmem:[%s1733_s4 + $0x1] ss:$0 sm:$0xff] }
  0x28   :  { %1197 = vmatpush3.bf16.msra.mxu0 %v1365_v46 }
  0x29   :  { %1219 = vmatpush3.bf16.msra.mxu1 %v1366_v47  ;;  %1198 = vmatprep.subr.bf16.mxu0 %v1367_v48 }
  0x2a   :  { %1220 = vmatprep.subr.bf16.mxu1 %v1368_v49 }
  0x2c   :  { %1199 = vmatpush3.bf16.msra.mxu0 %v1369_v50 }
  0x2d   :  { %1221 = vmatpush3.bf16.msra.mxu1 %v1370_v51  ;;  %1200 = vmatprep.subr.bf16.mxu0 %v1371_v52 }
  0x2e   :  { %1222 = vmatprep.subr.bf16.mxu1 %v1372_v53 }
  0x30   :  { %1201 = vmatpush3.bf16.msra.mxu0 %v1373_v54 }
  0x31   :  { %1223 = vmatpush3.bf16.msra.mxu1 %v1374_v55  ;;  %1202 = vmatprep.subr.bf16.mxu0 %v1375_v56 }
  0x32   :  { %1224 = vmatprep.subr.bf16.mxu1 %v1376_v57 }
  0x34   :  { %1203 = vmatpush3.bf16.msra.mxu0 %v1377_v58 }
  0x35   :  { %1225 = vmatpush3.bf16.msra.mxu1 %v1378_v59  ;;  %1204 = vmatprep.subr.bf16.mxu0 %v1379_v60  ;;  %v757_v59 = vld [vmem:[%s1731_s2] sm:$0xff]  ;;  %v758_v60 = vld [vmem:[%s1731_s2 + $0x8] sm:$0xff] }
  0x36   :  { %1226 = vmatprep.subr.bf16.mxu1 %v1380_v61 }
  0x38   :  { %1205 = vmatpush3.bf16.msra.mxu0 %v1381_v62  ;;  %v1305_v62 = vpack.c.bf16 %v758_v60, %v757_v59 }
  0x39   :  { %1227 = vmatpush3.bf16.msra.mxu1 %v1382_v63  ;;  %1206 = vmatprep.subr.bf16.mxu0 %v1383_v0  ;;  %v759_v0 = vld [vmem:[%s1731_s2 + $0x10] sm:$0xff] }
  0x3a   :  { %1228 = vmatprep.subr.bf16.mxu1 %v1384_v1  ;;  %v760_v1 = vld [vmem:[%s1731_s2 + $0x18] sm:$0xff] }
  0x3c   :  { %1207 = vmatpush3.bf16.msra.mxu0 %v1385_v2  ;;  %v1308_v2 = vpack.c.bf16 %v760_v1, %v759_v0 }
  0x3d   :  { %1229 = vmatpush3.bf16.msra.mxu1 %v1386_v3  ;;  %1208 = vmatprep.subr.bf16.mxu0 %v1387_v4  ;;  %v920_v4 = vld [vmem:[%s1732_s3 + $0x10] sm:$0xff] }
  0x3e   :  { %1230 = vmatprep.subr.bf16.mxu1 %v1388_v5  ;;  %v921_v5 = vld [vmem:[%s1732_s3 + $0x18] sm:$0xff] }
  0x40   :  { %1209 = vmatpush3.bf16.msra.mxu0 %v1389_v6  ;;  %v1314_v6 = vpack.c.bf16 %v921_v5, %v920_v4 }
  0x41   :  { %1231 = vmatpush3.bf16.msra.mxu1 %v1390_v7  ;;  %1310 = vmatprep.subr.bf16.mxu0 %v1399_v19  ;;  %v922_v7 = vld [vmem:[%s1732_s3 + $0x20] sm:$0xff] }
  0x42   :  { %1298 = vmatprep.subr.bf16.mxu1 %v1399_v19  ;;  %v1317_v9 = vpack.c.bf16 %v923_v8, %v922_v7 }
  0x43   :  { %706 = vmatmul.mubr.bf16.vlgmr.msra.gmra.mrb[4].mxu0 %v1074_v10  ;;  %v924_v10 = vld [vmem:[%s1732_s3 + $0x30] sm:$0xff] }
  0x44   :  { %747 = vmatmul.mubr.bf16.vlgmr.msra.gmra.mrb[4].mxu1 %v1076_v14  ;;  %1295 = vmatprep.mubr.msk.f32.mxu0 %vm1400_vm0, %v1401_v23  ;;  %v1320_v12 = vpack.c.bf16 %v925_v11, %v924_v10 }
  0x45   :  { %1300 = vmatpush3.bf16.msra.mxu1 %v1299_v18  ;;  %1265 = vmatprep.mubr.msk.f32.mxu1 %vm1400_vm0, %v1401_v23 }
  0x46   :  { %1301 = vmatprep.subr.bf16.mxu1 %v1399_v19  ;;  %1312 = vmatpush3.bf16.msra.mxu0 %v1311_v26 }
  0x47   :  { %1313 = vmatprep.subr.bf16.mxu0 %v1399_v19 }
  0x49   :  { %1303 = vmatpush3.bf16.msra.mxu1 %v1302_v22 }
  0x4a   :  { %1304 = vmatprep.subr.bf16.mxu1 %v1399_v19  ;;  %1315 = vmatpush3.bf16.msra.mxu0 %v1314_v6 }
  0x4b   :  { %1316 = vmatprep.subr.bf16.mxu0 %v1399_v19 }
  0x4e   :  { %1318 = vmatpush3.bf16.msra.mxu0 %v1317_v9 }
  0x4f   :  { %1319 = vmatprep.subr.bf16.mxu0 %v1399_v19 }
  0x52   :  { %1321 = vmatpush3.bf16.msra.mxu0 %v1320_v12 }
  0xf6   :  { %v1166_v27 = vpop.f32.mrb[0].mxu0 }
  0xf7   :  { %v1188_v28 = vpop.f32.mrb[0].mxu1  ;;  %v1167_v30 = vpop.f32.mrb[1].mxu0 }
  0xf8   :  { %v1168_v31 = vadd.f32 %v1167_v30, %v1166_v27  ;;  %v1189_v32 = vpop.f32.mrb[1].mxu1  ;;  %v1169_v33 = vpop.f32.mrb[2].mxu0  ;;  %v1148_v30 = vld [vmem:[%s1733_s4 + $0x4] ss:$0 sm:$0xff] }
  0xf9   :  { %v1190_v34 = vadd.f32 %v1189_v32, %v1188_v28  ;;  %v1191_v35 = vpop.f32.mrb[2].mxu1  ;;  %v1170_v36 = vpop.f32.mrb[3].mxu0 }
  0xfa   :  { %v626_v37 = vadd.f32 %v1168_v31, %v1069_v29  ;;  %v1171_v38 = vadd.f32 %v1170_v36, %v1169_v33  ;;  %v1192_v39 = vpop.f32.mrb[3].mxu1 }
  0xfb   :  { %v1193_v40 = vadd.f32 %v1192_v39, %v1191_v35 }
  0xfc   :  { %v667_v41 = vadd.f32 %v1190_v34, %v626_v37  ;;  %v629_v42 = vadd.f32 %v1171_v38, %v1069_v29  ;;  %v1402_v29 = vmov 0   ;;  %v1025_v37 = vlaneseq }
  0xfd   :  { %1326 = vset.pattern.permute.xlu0 %v1402_v29 }
  0xfe   :  { %v670_v43 = vadd.f32 %v1193_v40, %v629_v42  ;;  %v1026_v38 = vand.u32 127, %v1025_v37  ;;  %v1028_v39 = vshrl.u32 %v1025_v37, 7 }
 0x100   :  { %vm1029_vm4 = vcmp.eq.s32.totalorder %v1026_v38, %v1028_v39  ;;  %vm1054_vm5 = vcmp.lt.s32.totalorder %v1026_v38, 8  ;;  %vm1061_vm7 = vcmp.eq.s32.totalorder %v1026_v38, 8 }
 0x116   :  { %v1210_v44 = vpop.f32.mrb[4].mxu0 }
 0x117   :  { %v1232_v45 = vpop.f32.mrb[4].mxu1  ;;  %v1211_v46 = vpop.f32.mrb[5].mxu0 }
 0x118   :  { %v1212_v47 = vadd.f32 %v1211_v46, %v1210_v44  ;;  %v1233_v48 = vpop.f32.mrb[5].mxu1  ;;  %v1213_v49 = vpop.f32.mrb[6].mxu0 }
 0x119   :  { %v1234_v50 = vadd.f32 %v1233_v48, %v1232_v45  ;;  %v1235_v51 = vpop.f32.mrb[6].mxu1  ;;  %v1214_v52 = vpop.f32.mrb[7].mxu0 }
 0x11a   :  { %v708_v53 = vadd.f32 %v1212_v47, %v667_v41  ;;  %v1215_v54 = vadd.f32 %v1214_v52, %v1213_v49  ;;  %v1236_v55 = vpop.f32.mrb[7].mxu1 }
 0x11b   :  { %v1237_v56 = vadd.f32 %v1236_v55, %v1235_v51 }
 0x11c   :  { %v749_v57 = vadd.f32 %v1234_v50, %v708_v53  ;;  %v711_v58 = vadd.f32 %v1215_v54, %v670_v43  ;;  %v26_v50 = vld [vmem:[%s1733_s4 + $0x5] sm:$0x1] }
 0x11d   :  { %v1050_v55 = vsub.f32 1.0, %v26_v50 }
 0x11e   :  { %v752_v61 = vadd.f32 %v1237_v56, %v711_v58  ;;  %v755_v3 = vmax.f32 %v749_v57, 0.0 }
 0x120   :  { %v756_v63 = vmax.f32 %v752_v61, 0.0 }
 0x122   :  { %1266 = vmatmul.mubr.msk.f32.vlgmr.msra.gmra.mrb[8].mxu1 %vm765_vm1, %v756_v63 }
 0x123   :  { %1306 = vmatpush3.bf16.msra.mxu1 %v1305_v62  ;;  %1276 = vmatprep.mubr.msk.f32.mxu1 %vm1400_vm0, %v1401_v23 }
 0x124   :  { %1307 = vmatprep.subr.bf16.mxu1 %v1399_v19 }
 0x127   :  { %1309 = vmatpush3.bf16.msra.mxu1 %v1308_v2 }
 0x12a   :  { %1277 = vmatmul.mubr.msk.f32.vlgmr.msra.gmra.mrb[10].mxu1 %vm765_vm1, %v755_v3 }
 0x1f5   :  { %v835_v13 = vpop.f32.mrb[8].mxu1 }
 0x1f6   :  { %v1267_v14 = vpop.f32.mrb[9].mxu1 }
 0x1fd   :  { %v908_v16 = vpop.f32.mrb[10].mxu1 }
 0x1fe   :  { %v909_v17 = vadd.f32 %v908_v16, %v835_v13  ;;  %v1278_v18 = vpop.f32.mrb[11].mxu1 }
 0x200   :  { %v916_v19 = vadd.f32 %v1144_v15, %v909_v17 }
 0x202   :  { %v917_v20 = vmax.f32 %v916_v19, 0.0 }
 0x204   :  { %1296 = vmatmul.mubr.msk.f32.vlgmr.msra.gmra.mrb[8].mxu0 %vm930_vm2, %v917_v20 }
 0x2d7   :  { %v1000_v22 = vpop.f32.mrb[8].mxu0 }
 0x2d8   :  { %v1001_v23 = vadd.f32 %v1145_v21, %v1000_v22  ;;  %v1297_v24 = vpop.f32.mrb[9].mxu0 }
 0x2da   :  { %v1004_v26 = vmax.f32 %v1001_v23, 0.0 }
 0x2dc   :  { %v1009_v27 = vmul.f32 %v1147_v25, %v1004_v26 }
 0x2de   :  { %v1011_v28 = vsel %vm1010_vm3, %v1009_v27, 0.0 }
 0x2df   :  { %1012 = vadd.xlane.f32.xlu0 %v1011_v28 }
 0x36c   :  { %v1013_v31 = vpop.xlane.xlu0 %1012 }
 0x36d   :  { %v1018_v32 = vadd.f32 %v1148_v30, %v1013_v31 }
 0x36f   :  { %v1149_v33 = vmul.f32 -1.442695, %v1018_v32 }
 0x371   :  { %1391 = vpow2.f32 %v1149_v33 }
 0x37b   :  { %v1392_v34 = vpop.eup %1391 }
 0x37c   :  { %v1022_v35 = vadd.f32 1.0, %v1392_v34 }
 0x37e   :  { %1393 = vrcp.f32 %v1022_v35 }
 0x388   :  { %v1394_v36 = vpop.eup %1393 }
 0x389   :  { %1032 = vperm.xlu0 %1326, %v1394_v36  }
 0x408   :  { %v1033_v40 = vpop.permute.xlu0 %1032 }
 0x409   :  { %v1035_v41 = vsel %vm1029_vm4, %v1033_v40, 0.0 }
 0x40a   :  { %v1036_v42 = vrot.slane %v1035_v41, 4 }
 0x40c   :  { %v1037_v43 = vadd.f32 %v1036_v42, %v1035_v41 }
 0x40e   :  { %v1038_v44 = vrot.slane %v1037_v43, 2 }
 0x410   :  { %v1039_v45 = vadd.f32 %v1038_v44, %v1037_v43 }
 0x412   :  { %v1040_v46 = vrot.slane %v1039_v45, 1 }
 0x414   :  { %v1041_v47 = vadd.f32 %v1040_v46, %v1039_v45 }
 0x416   :  { %1395 = vlog2.f32 %v1041_v47  ;;  %v1045_v48 = vsub.f32 1.0, %v1041_v47 }
 0x418   :  { %1397 = vlog2.f32 %v1045_v48 }
 0x420   :  { %v1396_v49 = vpop.eup %1395 }
 0x421   :  { %v1043_v51 = vmul.f32 0.6931472, %v1396_v49 }
 0x422   :  { %v1398_v52 = vpop.eup %1397 }
 0x423   :  { %v1044_v53 = vmax.f32 %v1043_v51, -100.0  ;;  %v1047_v54 = vmul.f32 0.6931472, %v1398_v52 }
 0x425   :  { %v1048_v56 = vmax.f32 %v1047_v54, -100.0  ;;  %v1049_v57 = vmul.f32 %v1044_v53, %v26_v50 }
 0x427   :  { %v1051_v58 = vmul.f32 %v1050_v55, %v1048_v56 }
 0x429   :  { %v1052_v59 = vadd.f32 %v1051_v58, %v1049_v57 }
 0x42b   :  { %v1053_v60 = vsub.f32 0.0, %v1052_v59 }
 0x42d   :  { %v1055_v61 = vsel %vm1054_vm5, %v1053_v60, 0.0 }
 0x42e   :  { %v1057_v62 = vsel %vm1056_vm6, %v1055_v61, 0.0 }
 0x42f   :  { %1058 = vadd.xlane.f32.xlu1 %v1057_v62 }
 0x4bc   :  { %v1059_v63 = vpop.xlane.xlu1 %1058 }
 0x4bd   :  { %v1060_v0 = vmul.f32 0.125, %v1059_v63 }
 0x4bf   :  { %v1062_v1 = vsel %vm1061_vm7, %v1060_v0, 0.0 }
 0x4c0   :  { %v1063_v2 = vadd.f32 %v1062_v1, %v1041_v47 }
 0x4c2   :  { %1064 = vst [vmem:[%s1734_s5] sm:$0x1] %v1063_v2 }

</bundles_post_ra>
